<compile_context>
chip_gen: v5e
topology: v5e:2x2
jax: 0.10.0
libtpu: 0.0.40
codegen_flags: <defaults>
</compile_context>

<pallas_src>
import math

import jax
import jax.numpy as jnp
from jax.experimental import pallas as pl
from jax.experimental.pallas import tpu as pltpu

LANES = 128              # vreg lane width; all feature dims padded to this
ONES_LANE = LANES - 1    # lane carrying a constant 1.0 (folds biases into weights)
H1, H2, H3 = 64, 32, 16  # hidden widths of the critic


def _round_up(n, m):
    return ((n + m - 1) // m) * m


def critic_kernel(xa_ref, w_ref, out_ref):
    """xa_ref : (tb, 128) input slab  [x | a | zeros | 1]
       w_ref  : (4, 128, 128) packed weights (biases folded via the ones lane)
       out_ref: (tb, 128) lane-dense output slab, column 0 = Q(s, a)."""
    wdt = w_ref.dtype
    h = xa_ref[...].astype(wdt)
    # lin1 (+ action passthrough as relu(a) / relu(-a) into spare lanes)
    h = jnp.maximum(jnp.dot(h, w_ref[0], preferred_element_type=jnp.float32), 0.0)
    # lin2 on cat([h1, a], 1)  (action reconstructed from the +/- relu lanes)
    h = jnp.maximum(jnp.dot(h.astype(wdt), w_ref[1],
                            preferred_element_type=jnp.float32), 0.0)
    # lin3
    h = jnp.maximum(jnp.dot(h.astype(wdt), w_ref[2],
                            preferred_element_type=jnp.float32), 0.0)
    # lin4 (no activation)
    out_ref[...] = jnp.dot(h.astype(wdt), w_ref[3],
                           preferred_element_type=jnp.float32)


def prepare_params(params, dtype=jnp.float32):
    """One-time packing of the 4 linear layers into a (4, 128, 128) slab.

    Each 128x128 block computes y = [act | ... | 1] @ W with the bias stored in
    row ONES_LANE and W[ONES_LANE, ONES_LANE] = 1 so the ones lane survives
    ReLU (relu(1) == 1) into the next layer.  The action is carried through
    layer 1 as relu(a) and relu(-a) in lanes [H1, H1+2A) and recombined by
    layer 2 (a == relu(a) - relu(-a)), avoiding an in-kernel concat or an
    extra dot.  Call once; reuse the returned slab for every forward."""
    (w1, b1), (w2, b2), (w3, b3), (w4, b4) = params
    b1, b2, b3, b4 = (jnp.reshape(b, (-1,)) for b in (b1, b2, b3, b4))
    S = w1.shape[0]
    A = w2.shape[0] - H1
    assert S + A <= ONES_LANE, "state+action must leave room for the ones lane"
    assert H1 + 2 * A <= ONES_LANE, "action passthrough lanes must fit"

    def z():
        return jnp.zeros((LANES, LANES), jnp.float32)

    eye_a = jnp.eye(A, dtype=jnp.float32)
    w2h, w2a = w2[:H1], w2[H1:H1 + A]

    W1 = (z().at[:S, :H1].set(w1)
             .at[ONES_LANE, :H1].set(b1)
             .at[S:S + A, H1:H1 + A].set(eye_a)            # -> relu(a)
             .at[S:S + A, H1 + A:H1 + 2 * A].set(-eye_a)   # -> relu(-a)
             .at[ONES_LANE, ONES_LANE].set(1.0))
    W2 = (z().at[:H1, :H2].set(w2h)
             .at[H1:H1 + A, :H2].set(w2a)                  # + relu(a)  @ w2a
             .at[H1 + A:H1 + 2 * A, :H2].set(-w2a)         # - relu(-a) @ w2a
             .at[ONES_LANE, :H2].set(b2)
             .at[ONES_LANE, ONES_LANE].set(1.0))
    W3 = (z().at[:H2, :H3].set(w3)
             .at[ONES_LANE, :H3].set(b3)
             .at[ONES_LANE, ONES_LANE].set(1.0))
    W4 = (z().at[:H3, :1].set(w4)
             .at[ONES_LANE, 0].set(b4[0]))
    return jnp.stack([W1, W2, W3, W4]).astype(dtype)


def critic_forward(x, a, wpack, *, block_b=512):
    """x: (B, state_size) f32, a: (B, action_size) f32 -> (B, 1) f32."""
    B, S = x.shape
    _, A = a.shape

    # Lane-dense input slab: [x | a | zeros | 1]  (the ones lane carries biases).
    pad_w = LANES - (S + A) - 1
    xa = jnp.concatenate(
        [x.astype(jnp.float32), a.astype(jnp.float32),
         jnp.zeros((B, pad_w), jnp.float32), jnp.ones((B, 1), jnp.float32)],
        axis=1)

    # Batch tile: multiple of 8 sublanes, at most block_b rows.
    tb = _round_up(min(block_b, _round_up(B, 8)), 8)
    B_pad = _round_up(B, tb)
    if B_pad != B:
        xa = jnp.pad(xa, ((0, B_pad - B), (0, 0)))

    out = pl.pallas_call(
        critic_kernel,
        out_shape=jax.ShapeDtypeStruct((B_pad, LANES), jnp.float32),
        grid_spec=pltpu.PrefetchScalarGridSpec(
            num_scalar_prefetch=0,
            grid=(B_pad // tb,),
            in_specs=[
                pl.BlockSpec((tb, LANES), lambda i: (i, 0)),           # batch tile
                pl.BlockSpec((4, LANES, LANES), lambda i: (0, 0, 0)),  # resident weights
            ],
            out_specs=pl.BlockSpec((tb, LANES), lambda i: (i, 0)),
        ),
        compiler_params=pltpu.CompilerParams(
            dimension_semantics=("parallel",)),
    )(xa, wpack)
    return out[:B, :1]


def init_linear(key, fan_in, fan_out):
    # Matches PyTorch nn.Linear default init: U(-1/sqrt(fan_in), 1/sqrt(fan_in)).
    bound = 1.0 / math.sqrt(fan_in)
    kw, kb = jax.random.split(key)
    w = jax.random.uniform(kw, (fan_in, fan_out), jnp.float32, -bound, bound)
    b = jax.random.uniform(kb, (1, fan_out), jnp.float32, -bound, bound)
    return w, b


def reference_forward(x, a, params):
    (w1, b1), (w2, b2), (w3, b3), (w4, b4) = params
    h = jnp.maximum(x @ w1 + b1, 0.0)
    h = jnp.maximum(jnp.concatenate([h, a], axis=1) @ w2 + b2, 0.0)
    h = jnp.maximum(h @ w3 + b3, 0.0)
    return h @ w4 + b4


if __name__ == "__main__":
    state_size, action_size = 3, 1  # pendulum-sized critic

    key = jax.random.PRNGKey(0)
    k1, k2, k3, k4, kx, ka, kx2, ka2 = jax.random.split(key, 8)

    params = (
        init_linear(k1, state_size, 64),
        init_linear(k2, 64 + action_size, 32),
        init_linear(k3, 32, 16),
        init_linear(k4, 16, 1),
    )
    # One-time parameter packing (use dtype=jnp.bfloat16 on v6e/v7x for half DMA).
    wpack = prepare_params(params)

    fwd = jax.jit(critic_forward, static_argnames=("block_b",))

    # Small per-environment-step batch.
    B = 8
    x = jax.random.normal(kx, (B, state_size), jnp.float32)
    a = jax.random.uniform(ka, (B, action_size), jnp.float32, -2.0, 2.0)
    q = jax.block_until_ready(fwd(x, a, wpack))
    q_ref = reference_forward(x, a, params)
    assert q.shape == (B, 1)
    assert jnp.allclose(q, q_ref, atol=1e-5, rtol=1e-5)

    # Larger, non-tile-multiple batch exercising the batch grid (multiple tiles).
    B2 = 300
    x2 = jax.random.normal(kx2, (B2, state_size), jnp.float32)
    a2 = jax.random.uniform(ka2, (B2, action_size), jnp.float32, -2.0, 2.0)
    q2 = jax.block_until_ready(fwd(x2, a2, wpack, block_b=128))
    q2_ref = reference_forward(x2, a2, params)
    assert q2.shape == (B2, 1)
    assert jnp.allclose(q2, q2_ref, atol=1e-5, rtol=1e-5)

    print("KERNEL_OK")
</pallas_src>

<mosaic_0001>
module attributes {stable_mosaic.version = 11 : i64} {
  func.func @critic_kernel(%arg0: i32, %arg1: memref<8x128xf32, #tpu.memory_space<vmem>>, %arg2: memref<4x128x128xf32, #tpu.memory_space<vmem>>, %arg3: memref<8x128xf32, #tpu.memory_space<vmem>>) attributes {dimension_semantics = [#tpu.dimension_semantics<parallel>], iteration_bounds = array<i64: 1>, scalar_prefetch = 0 : i64, scratch_operands = 0 : i64, tpu.core_type = #tpu.core_type<tc>, window_params = [{transform_indices = @transform_0, window_bounds = array<i64: 8, 128>}, {pipeline_mode = #tpu.pipeline_mode<synchronous>, transform_indices = @transform_1, window_bounds = array<i64: 4, 128, 128>}, {transform_indices = @transform_2, window_bounds = array<i64: 8, 128>}]} {
    %c0 = arith.constant 0 : index
    %c0_0 = arith.constant 0 : index
    %0 = vector.load %arg1[%c0, %c0_0] : memref<8x128xf32, #tpu.memory_space<vmem>>, vector<8x128xf32>
    %c0_1 = arith.constant 0 : index
    %c0_2 = arith.constant 0 : index
    %c0_3 = arith.constant 0 : index
    %1 = vector.load %arg2[%c0_1, %c0_2, %c0_3] : memref<4x128x128xf32, #tpu.memory_space<vmem>>, vector<1x128x128xf32>
    %2 = vector.shape_cast %1 : vector<1x128x128xf32> to vector<128x128xf32>
    %cst = arith.constant dense<0.000000e+00> : vector<8x128xf32>
    %3 = tpu.matmul %0, %2, %cst {dimension_numbers = #tpu.dot_dimension_numbers<[1], [0], [0], [1], [0, 0, 1, 1], [], []>} : vector<8x128xf32>, vector<128x128xf32>, vector<8x128xf32> -> vector<8x128xf32>
    %cst_4 = arith.constant 0.000000e+00 : f32
    %4 = vector.broadcast %cst_4 : f32 to vector<8x128xf32>
    %5 = arith.maximumf %3, %4 : vector<8x128xf32>
    %c1 = arith.constant 1 : index
    %c0_5 = arith.constant 0 : index
    %c0_6 = arith.constant 0 : index
    %6 = vector.load %arg2[%c1, %c0_5, %c0_6] : memref<4x128x128xf32, #tpu.memory_space<vmem>>, vector<1x128x128xf32>
    %7 = vector.shape_cast %6 : vector<1x128x128xf32> to vector<128x128xf32>
    %cst_7 = arith.constant dense<0.000000e+00> : vector<8x128xf32>
    %8 = tpu.matmul %5, %7, %cst_7 {dimension_numbers = #tpu.dot_dimension_numbers<[1], [0], [0], [1], [0, 0, 1, 1], [], []>} : vector<8x128xf32>, vector<128x128xf32>, vector<8x128xf32> -> vector<8x128xf32>
    %cst_8 = arith.constant 0.000000e+00 : f32
    %9 = vector.broadcast %cst_8 : f32 to vector<8x128xf32>
    %10 = arith.maximumf %8, %9 : vector<8x128xf32>
    %c2 = arith.constant 2 : index
    %c0_9 = arith.constant 0 : index
    %c0_10 = arith.constant 0 : index
    %11 = vector.load %arg2[%c2, %c0_9, %c0_10] : memref<4x128x128xf32, #tpu.memory_space<vmem>>, vector<1x128x128xf32>
    %12 = vector.shape_cast %11 : vector<1x128x128xf32> to vector<128x128xf32>
    %cst_11 = arith.constant dense<0.000000e+00> : vector<8x128xf32>
    %13 = tpu.matmul %10, %12, %cst_11 {dimension_numbers = #tpu.dot_dimension_numbers<[1], [0], [0], [1], [0, 0, 1, 1], [], []>} : vector<8x128xf32>, vector<128x128xf32>, vector<8x128xf32> -> vector<8x128xf32>
    %cst_12 = arith.constant 0.000000e+00 : f32
    %14 = vector.broadcast %cst_12 : f32 to vector<8x128xf32>
    %15 = arith.maximumf %13, %14 : vector<8x128xf32>
    %c3 = arith.constant 3 : index
    %c0_13 = arith.constant 0 : index
    %c0_14 = arith.constant 0 : index
    %16 = vector.load %arg2[%c3, %c0_13, %c0_14] : memref<4x128x128xf32, #tpu.memory_space<vmem>>, vector<1x128x128xf32>
    %17 = vector.shape_cast %16 : vector<1x128x128xf32> to vector<128x128xf32>
    %cst_15 = arith.constant dense<0.000000e+00> : vector<8x128xf32>
    %18 = tpu.matmul %15, %17, %cst_15 {dimension_numbers = #tpu.dot_dimension_numbers<[1], [0], [0], [1], [0, 0, 1, 1], [], []>} : vector<8x128xf32>, vector<128x128xf32>, vector<8x128xf32> -> vector<8x128xf32>
    %c0_16 = arith.constant 0 : index
    %c0_17 = arith.constant 0 : index
    %19 = vector.load %arg3[%c0_16, %c0_17] : memref<8x128xf32, #tpu.memory_space<vmem>>, vector<8x128xf32>
    tpu.vector_store %arg3[%c0_16, %c0_17], %18 {strides = array<i32>} : memref<8x128xf32, #tpu.memory_space<vmem>>, vector<8x128xf32>,
    return
  }
  func.func @transform_0(%arg0: i32) -> (i32, i32) {
    %c0_i32 = arith.constant 0 : i32
    %c0_i32_0 = arith.constant 0 : i32
    return %arg0, %c0_i32 : i32, i32
  }
  func.func @transform_1(%arg0: i32) -> (i32, i32, i32) {
    %c0_i32 = arith.constant 0 : i32
    %c0_i32_0 = arith.constant 0 : i32
    %c0_i32_1 = arith.constant 0 : i32
    %c0_i32_2 = arith.constant 0 : i32
    return %c0_i32, %c0_i32_0, %c0_i32_1 : i32, i32, i32
  }
  func.func @transform_2(%arg0: i32) -> (i32, i32) {
    %c0_i32 = arith.constant 0 : i32
    %c0_i32_0 = arith.constant 0 : i32
    return %arg0, %c0_i32 : i32, i32
  }
}

</mosaic_0001>

<bundles_post_ra>
// kernel: critic_forward.1
= control target key start
LH: loop header
LB: loop body
LE: loop exit
PB: predicated region body
PF: predicated region fallthrough
CT: control target
= control target key end

     0   :  { %7 = vsyncpa [#allocation3], 0  ;;  %s213_s12 = smov [#allocation2]   ;;  %s214_s14 = smov 128   ;;  %s240_s0 = inlined_call_operand.vmem [shape: f32[8,128], index: 0, kind: input, shape index: {}]   ;;  %s241_s1 = inlined_call_operand.hbm [shape: f32[4,128,128], index: 1, kind: input, shape index: {}]   ;;  %s242_s2 = inlined_call_operand.vmem [shape: f32[8,128], index: 2, kind: output, shape index: {}]  }
   0x1   :  { %s14_s11 = sshll.u32 %s241_s1, 4  ;;  %s16_s13 = sshll.u32 %s213_s12, 4  ;;  %s15_s11 = int_to_ptr.hbm [resolvable:$true] %s14_s11  ;;  %s17_s13 = int_to_ptr.vmem [resolvable:$true] %s16_s13 }
   0x2   :  { %s215_s15 = smov 8  }
   0x3   :  { %22 = dma.hbm_to_vmem [thread:$0]  %s15_s11, 8192, %s17_s13, [#allocation3], %s214_s14, %s214_s14, %s215_s15  }
   0x4   :  { %211 = dma.done.wait [#allocation3], 8192  }
   0x5   :  { %212 = vsyncadd [#allocation3], 4294959104  ;;  %v43_v0 = vld [vmem:[#allocation2 + $0x78] sm:$0xff]  ;;  %v42_v1 = vld [vmem:[#allocation2 + $0x70] sm:$0xff] }
   0x6   :  { %44 = vmatpush.msra.mxu0 %v43_v0  ;;  %v41_v2 = vld [vmem:[#allocation2 + $0x68] sm:$0xff]  ;;  %v40_v3 = vld [vmem:[#allocation2 + $0x60] sm:$0xff]  ;;  %v81_v4 = vld [vmem:[#allocation2 + $0xf8] sm:$0xff] }
   0x7   :  { %v39_v5 = vld [vmem:[#allocation2 + $0x58] sm:$0xff]  ;;  %82 = vmatpush.msra.mxu1 %v81_v4  ;;  %v80_v6 = vld [vmem:[#allocation2 + $0xf0] sm:$0xff]  ;;  %v79_v7 = vld [vmem:[#allocation2 + $0xe8] sm:$0xff] }
   0x8   :  { %45 = vmatpush.msra.mxu0 %v42_v1  ;;  %v38_v8 = vld [vmem:[#allocation2 + $0x50] sm:$0xff]  ;;  %v78_v9 = vld [vmem:[#allocation2 + $0xe0] sm:$0xff]  ;;  %v37_v10 = vld [vmem:[#allocation2 + $0x48] sm:$0xff] }
   0x9   :  { %83 = vmatpush.msra.mxu1 %v80_v6  ;;  %v77_v11 = vld [vmem:[#allocation2 + $0xd8] sm:$0xff]  ;;  %v36_v12 = vld [vmem:[#allocation2 + $0x40] sm:$0xff]  ;;  %v76_v13 = vld [vmem:[#allocation2 + $0xd0] sm:$0xff] }
   0xa   :  { %46 = vmatpush.msra.mxu0 %v41_v2  ;;  %v35_v14 = vld [vmem:[#allocation2 + $0x38] sm:$0xff]  ;;  %v75_v15 = vld [vmem:[#allocation2 + $0xc8] sm:$0xff]  ;;  %v34_v16 = vld [vmem:[#allocation2 + $0x30] sm:$0xff] }
   0xb   :  { %84 = vmatpush.msra.mxu1 %v79_v7  ;;  %v74_v17 = vld [vmem:[#allocation2 + $0xc0] sm:$0xff]  ;;  %v33_v18 = vld [vmem:[#allocation2 + $0x28] sm:$0xff]  ;;  %v73_v19 = vld [vmem:[#allocation2 + $0xb8] sm:$0xff] }
   0xc   :  { %47 = vmatpush.msra.mxu0 %v40_v3  ;;  %v32_v20 = vld [vmem:[#allocation2 + $0x20] sm:$0xff]  ;;  %v72_v21 = vld [vmem:[#allocation2 + $0xb0] sm:$0xff]  ;;  %v31_v22 = vld [vmem:[#allocation2 + $0x18] sm:$0xff] }
   0xd   :  { %85 = vmatpush.msra.mxu1 %v78_v9  ;;  %v71_v23 = vld [vmem:[#allocation2 + $0xa8] sm:$0xff]  ;;  %v30_v24 = vld [vmem:[#allocation2 + $0x10] sm:$0xff]  ;;  %v70_v25 = vld [vmem:[#allocation2 + $0xa0] sm:$0xff] }
   0xe   :  { %48 = vmatpush.msra.mxu0 %v39_v5  ;;  %v29_v26 = vld [vmem:[#allocation2 + $0x8] sm:$0xff]  ;;  %v69_v27 = vld [vmem:[#allocation2 + $0x98] sm:$0xff]  ;;  %v28_v28 = vld [vmem:[#allocation2] sm:$0xff] }
   0xf   :  { %86 = vmatpush.msra.mxu1 %v77_v11  ;;  %v27_v29 = vld [vmem:[%s240_s0] sm:$0xff]  ;;  %v68_v30 = vld [vmem:[#allocation2 + $0x90] sm:$0xff]  ;;  %v67_v31 = vld [vmem:[#allocation2 + $0x88] sm:$0xff] }
  0x10   :  { %49 = vmatpush.msra.mxu0 %v38_v8  ;;  %v66_v32 = vld [vmem:[#allocation2 + $0x80] sm:$0xff]  ;;  %v119_v33 = vld [vmem:[#allocation2 + $0x178] sm:$0xff]  ;;  %v118_v34 = vld [vmem:[#allocation2 + $0x170] sm:$0xff] }
  0x11   :  { %87 = vmatpush.msra.mxu1 %v76_v13  ;;  %120 = vmatpush.msra.mxu2 %v119_v33  ;;  %v117_v35 = vld [vmem:[#allocation2 + $0x168] sm:$0xff]  ;;  %v116_v36 = vld [vmem:[#allocation2 + $0x160] sm:$0xff]  ;;  %v115_v37 = vld [vmem:[#allocation2 + $0x158] sm:$0xff] }
  0x12   :  { %50 = vmatpush.msra.mxu0 %v37_v10  ;;  %v114_v38 = vld [vmem:[#allocation2 + $0x150] sm:$0xff]  ;;  %v113_v39 = vld [vmem:[#allocation2 + $0x148] sm:$0xff]  ;;  %v112_v40 = vld [vmem:[#allocation2 + $0x140] sm:$0xff] }
  0x13   :  { %88 = vmatpush.msra.mxu1 %v75_v15  ;;  %121 = vmatpush.msra.mxu2 %v118_v34  ;;  %v111_v41 = vld [vmem:[#allocation2 + $0x138] sm:$0xff]  ;;  %v110_v42 = vld [vmem:[#allocation2 + $0x130] sm:$0xff]  ;;  %v109_v43 = vld [vmem:[#allocation2 + $0x128] sm:$0xff] }
  0x14   :  { %51 = vmatpush.msra.mxu0 %v36_v12  ;;  %v108_v44 = vld [vmem:[#allocation2 + $0x120] sm:$0xff]  ;;  %v107_v45 = vld [vmem:[#allocation2 + $0x118] sm:$0xff]  ;;  %v106_v46 = vld [vmem:[#allocation2 + $0x110] sm:$0xff] }
  0x15   :  { %89 = vmatpush.msra.mxu1 %v74_v17  ;;  %122 = vmatpush.msra.mxu2 %v117_v35  ;;  %v105_v49 = vld [vmem:[#allocation2 + $0x108] sm:$0xff]  ;;  %v104_v50 = vld [vmem:[#allocation2 + $0x100] sm:$0xff]  ;;  %v157_v51 = vld [vmem:[#allocation2 + $0x1f8] sm:$0xff] }
  0x16   :  { %52 = vmatpush.msra.mxu0 %v35_v14  ;;  %v156_v52 = vld [vmem:[#allocation2 + $0x1f0] sm:$0xff]  ;;  %158 = vmatpush.msra.mxu3 %v157_v51  ;;  %v155_v53 = vld [vmem:[#allocation2 + $0x1e8] sm:$0xff]  ;;  %v154_v54 = vld [vmem:[#allocation2 + $0x1e0] sm:$0xff] }
  0x17   :  { %90 = vmatpush.msra.mxu1 %v73_v19  ;;  %123 = vmatpush.msra.mxu2 %v116_v36  ;;  %v153_v55 = vld [vmem:[#allocation2 + $0x1d8] sm:$0xff]  ;;  %v152_v56 = vld [vmem:[#allocation2 + $0x1d0] sm:$0xff]  ;;  %v151_v57 = vld [vmem:[#allocation2 + $0x1c8] sm:$0xff] }
  0x18   :  { %53 = vmatpush.msra.mxu0 %v34_v16  ;;  %159 = vmatpush.msra.mxu3 %v156_v52  ;;  %v150_v58 = vld [vmem:[#allocation2 + $0x1c0] sm:$0xff]  ;;  %v149_v59 = vld [vmem:[#allocation2 + $0x1b8] sm:$0xff]  ;;  %v148_v60 = vld [vmem:[#allocation2 + $0x1b0] sm:$0xff] }
  0x19   :  { %91 = vmatpush.msra.mxu1 %v72_v21  ;;  %124 = vmatpush.msra.mxu2 %v115_v37  ;;  %v147_v61 = vld [vmem:[#allocation2 + $0x1a8] sm:$0xff]  ;;  %v146_v62 = vld [vmem:[#allocation2 + $0x1a0] sm:$0xff]  ;;  %v145_v63 = vld [vmem:[#allocation2 + $0x198] sm:$0xff] }
  0x1a   :  { %54 = vmatpush.msra.mxu0 %v33_v18  ;;  %160 = vmatpush.msra.mxu3 %v155_v53  ;;  %v144_v0 = vld [vmem:[#allocation2 + $0x190] sm:$0xff]  ;;  %v143_v3 = vld [vmem:[#allocation2 + $0x188] sm:$0xff]  ;;  %v142_v4 = vld [vmem:[#allocation2 + $0x180] sm:$0xff] }
  0x1b   :  { %92 = vmatpush.msra.mxu1 %v71_v23  ;;  %125 = vmatpush.msra.mxu2 %v114_v38 }
  0x1c   :  { %55 = vmatpush.msra.mxu0 %v32_v20  ;;  %161 = vmatpush.msra.mxu3 %v154_v54 }
  0x1d   :  { %93 = vmatpush.msra.mxu1 %v70_v25  ;;  %126 = vmatpush.msra.mxu2 %v113_v39 }
  0x1e   :  { %56 = vmatpush.msra.mxu0 %v31_v22  ;;  %162 = vmatpush.msra.mxu3 %v153_v55 }
  0x1f   :  { %94 = vmatpush.msra.mxu1 %v69_v27  ;;  %127 = vmatpush.msra.mxu2 %v112_v40 }
  0x20   :  { %57 = vmatpush.msra.mxu0 %v30_v24  ;;  %163 = vmatpush.msra.mxu3 %v152_v56 }
  0x21   :  { %95 = vmatpush.msra.mxu1 %v68_v30  ;;  %128 = vmatpush.msra.mxu2 %v111_v41 }
  0x22   :  { %58 = vmatpush.msra.mxu0 %v29_v26  ;;  %164 = vmatpush.msra.mxu3 %v151_v57 }
  0x23   :  { %96 = vmatpush.msra.mxu1 %v67_v31  ;;  %129 = vmatpush.msra.mxu2 %v110_v42 }
  0x24   :  { %59 = vmatpush.msra.mxu0 %v28_v28  ;;  %165 = vmatpush.msra.mxu3 %v150_v58 }
  0x25   :  { %60 = vmatmul.f32.vlgmr.msra.gmra.mxu0 %v27_v29  ;;  %97 = vmatpush.msra.mxu1 %v66_v32 }
  0x26   :  { %130 = vmatpush.msra.mxu2 %v109_v43  ;;  %166 = vmatpush.msra.mxu3 %v149_v59 }
  0x28   :  { %131 = vmatpush.msra.mxu2 %v108_v44  ;;  %167 = vmatpush.msra.mxu3 %v148_v60 }
  0x2a   :  { %132 = vmatpush.msra.mxu2 %v107_v45  ;;  %168 = vmatpush.msra.mxu3 %v147_v61 }
  0x2c   :  { %133 = vmatpush.msra.mxu2 %v106_v46  ;;  %169 = vmatpush.msra.mxu3 %v146_v62 }
  0x2e   :  { %134 = vmatpush.msra.mxu2 %v105_v49  ;;  %170 = vmatpush.msra.mxu3 %v145_v63 }
  0x30   :  { %135 = vmatpush.msra.mxu2 %v104_v50  ;;  %171 = vmatpush.msra.mxu3 %v144_v0 }
  0x32   :  { %172 = vmatpush.msra.mxu3 %v143_v3 }
  0x34   :  { %173 = vmatpush.msra.mxu3 %v142_v4 }
  0xa2   :  { %v61_v47 = vpop.f32.mrf.mxu0 }
  0xa3   :  { %v64_v48 = vmax.f32 %v61_v47, 0.0 }
  0xa5   :  { %98 = vmatmul.f32.vlgmr.msra.gmra.mxu1 %v64_v48 }
 0x122   :  { %v99_v1 = vpop.f32.mrf.mxu1 }
 0x123   :  { %v102_v2 = vmax.f32 %v99_v1, 0.0 }
 0x125   :  { %136 = vmatmul.f32.vlgmr.msra.gmra.mxu2 %v102_v2 }
 0x1a8   :  { %v137_v5 = vpop.f32.mrf.mxu2 }
 0x1a9   :  { %v140_v6 = vmax.f32 %v137_v5, 0.0 }
 0x1ab   :  { %174 = vmatmul.f32.vlgmr.msra.gmra.mxu3 %v140_v6 }
 0x22e   :  { %v175_v7 = vpop.f32.mrf.mxu3 }
 0x22f   :  { %178 = vst [vmem:[%s242_s2] sm:$0xff] %v175_v7 }
 0x230   :  { %183 = vsyncpa [#allocation3], 1 }

</bundles_post_ra>
